<compile_context>
chip_gen: v7x
topology: tpu7x:2x2x1
jax: 0.10.0
libtpu: 0.0.40
codegen_flags: <defaults>
</compile_context>

<pallas_src>
import functools
import math

import jax
import jax.numpy as jnp
from jax import lax
from jax.experimental import pallas as pl
from jax.experimental.pallas import tpu as pltpu

_INV_SQRT2 = 1.0 / math.sqrt(2.0)
_GELU_TANH_C = math.sqrt(2.0 / math.pi)


def _bert_intermediate_kernel(x_ref, attn_ref, w1_ref, b1_ref, w2_ref, b2_ref,
                              gamma_ref, beta_ref, o_ref, acc_ref, *,
                              approximate_gelu: bool, eps: float):
    # Grid = (token tiles, I chunks).  k is the reduction axis over the intermediate dim.
    k = pl.program_id(1)

    @pl.when(k == 0)
    def _init():
        acc_ref[...] = jnp.zeros_like(acc_ref)

    # dense1 chunk: bf16 [tile_t, H] x bf16 [H, tile_i] -> f32 accumulate on the MXU.
    h = jnp.dot(x_ref[...], w1_ref[...], preferred_element_type=jnp.float32)
    h = h + b1_ref[...].astype(jnp.float32)

    if approximate_gelu:
        # tanh-approx GELU: uses the EUP slot instead of a VPU erf polynomial.
        h = 0.5 * h * (1.0 + jnp.tanh(_GELU_TANH_C * (h + 0.044715 * h * h * h)))
    else:
        # exact (erf-based) GELU, matching the PyTorch reference.
        h = 0.5 * h * (1.0 + lax.erf(h * _INV_SQRT2))

    # dense2 chunk: cast back to the weight dtype (bf16 MXU fast path), accumulate f32.
    acc_ref[...] += jnp.dot(h.astype(w2_ref.dtype), w2_ref[...],
                            preferred_element_type=jnp.float32)

    # dropout -> identity (eval mode).  TODO(synk): training-mode dropout mask.

    @pl.when(k == pl.num_programs(1) - 1)
    def _epilogue():
        # bias2 + residual add (f32) + BertLayerNorm (TF-style, eps inside the sqrt).
        y = (acc_ref[...] + b2_ref[...].astype(jnp.float32)
             + attn_ref[...].astype(jnp.float32))
        u = jnp.mean(y, axis=-1, keepdims=True)
        s = jnp.mean(jnp.square(y - u), axis=-1, keepdims=True)
        y = (y - u) * lax.rsqrt(s + eps)                    # EUP rsqrt
        o_ref[...] = (gamma_ref[...].astype(jnp.float32) * y
                      + beta_ref[...].astype(jnp.float32)).astype(o_ref.dtype)


def _pick_tile_t(T: int, tile_t_max: int, compute_dtype) -> int:
    # bf16 packs 16 rows per sublane tile; round up to 16 (8 for 32-bit dtypes).
    granule = 16 if jnp.dtype(compute_dtype).itemsize == 2 else 8
    tile = min(T, tile_t_max)
    return max(granule, ((tile + granule - 1) // granule) * granule)


def _pick_tile_i(I: int, tile_i_max: int = 512) -> int:
    # The reduction axis must divide I exactly (padded k-chunks would corrupt the
    # accumulator); fall back to a single chunk otherwise.
    for cand in (tile_i_max, 384, 256, 128):
        if cand <= tile_i_max and I % cand == 0:
            return cand
    return I


def _vmem_cap_bytes() -> int:
    # Leave ~16 MiB headroom for Mosaic-internal scratch; fall back conservatively.
    try:
        phys = int(pltpu.get_tpu_info().vmem_capacity_bytes)
    except Exception:  # pragma: no cover - info query unavailable
        phys = 64 << 20
    return max(32 << 20, min(phys - (16 << 20), 112 << 20))


def bert_intermediate(hidden_states, attention_output,
                      w1, b1, w2, b2, gamma, beta, *,
                      eps: float = 1e-12,
                      approximate_gelu: bool = False,
                      compute_dtype=jnp.bfloat16,
                      tile_t_max: int = 512,
                      tile_i_max: int = 512,
                      training: bool = False):
    """hidden_states, attention_output: [B, S, H] -> [B, S, H]."""
    if training:
        # TODO(synk): training-mode dropout not implemented; eval-mode identity only.
        raise NotImplementedError("training-mode dropout is not implemented")

    B, S, H = hidden_states.shape
    T = B * S
    I = w1.shape[1]
    out_dtype = hidden_states.dtype

    # bf16 matmul operands into the MXU; residual / biases / gamma / beta stay f32.
    x2d = hidden_states.reshape(T, H).astype(compute_dtype)
    a2d = attention_output.reshape(T, H).astype(jnp.float32)   # residual kept in f32
    w1c = w1.astype(compute_dtype)
    w2c = w2.astype(compute_dtype)
    b1r = b1.reshape(1, I).astype(jnp.float32)
    b2r = b2.reshape(1, H).astype(jnp.float32)
    g2d = gamma.reshape(1, H).astype(jnp.float32)
    bt2d = beta.reshape(1, H).astype(jnp.float32)

    tile_t = _pick_tile_t(T, tile_t_max, compute_dtype)
    tile_i = _pick_tile_i(I, tile_i_max)
    grid = (pl.cdiv(T, tile_t), I // tile_i)

    act_bytes = jnp.dtype(compute_dtype).itemsize
    out_bytes = jnp.dtype(out_dtype).itemsize

    # Advisory cost estimate (dense1 + dense2 dominate; GELU over [T, I] is the
    # transcendental bulk, plus one rsqrt per row).
    cost = pl.CostEstimate(
        flops=4 * T * H * I,
        transcendentals=T * I + T,
        bytes_accessed=(T * H * act_bytes          # x
                        + T * H * 4                # attn (f32 residual)
                        + 2 * H * I * act_bytes    # w1, w2 (streamed)
                        + (I + 3 * H) * 4          # b1, b2, gamma, beta
                        + T * H * out_bytes),      # output
    )

    # VMEM budget: double-buffered streamed blocks + the f32 accumulator scratch +
    # the per-chunk f32 intermediate (plus its bf16 cast copy) + slack.  Cap below
    # physical VMEM so Mosaic has headroom for its own scratch (relevant on v7x).
    budget = (2 * tile_t * H * act_bytes          # x tiles
              + 2 * tile_t * H * 4                # attn tiles (f32)
              + 2 * tile_t * H * out_bytes        # out tiles
              + 2 * H * tile_i * act_bytes        # w1 chunks
              + 2 * tile_i * H * act_bytes        # w2 chunks
              + 2 * tile_i * 4 + 6 * H * 4        # b1 chunks + b2/gamma/beta
              + tile_t * H * 4                    # accumulator scratch
              + tile_t * tile_i * 6               # f32 intermediate + bf16 cast copy
              + (8 << 20))                        # compiler-internal slack
    vmem_limit = int(min(max(budget, 32 << 20), _vmem_cap_bytes()))

    kernel = functools.partial(_bert_intermediate_kernel,
                               approximate_gelu=approximate_gelu, eps=eps)

    out = pl.pallas_call(
        kernel,
        out_shape=jax.ShapeDtypeStruct((T, H), out_dtype),
        grid=grid,
        in_specs=[
            pl.BlockSpec((tile_t, H), lambda i, k: (i, 0)),     # x tile (pipelined)
            pl.BlockSpec((tile_t, H), lambda i, k: (i, 0)),     # attn tile (f32)
            pl.BlockSpec((H, tile_i), lambda i, k: (0, k)),     # w1 chunk (streamed)
            pl.BlockSpec((1, tile_i), lambda i, k: (0, k)),     # b1 chunk
            pl.BlockSpec((tile_i, H), lambda i, k: (k, 0)),     # w2 chunk (streamed)
            pl.BlockSpec((1, H), lambda i, k: (0, 0)),          # b2
            pl.BlockSpec((1, H), lambda i, k: (0, 0)),          # gamma
            pl.BlockSpec((1, H), lambda i, k: (0, 0)),          # beta
        ],
        out_specs=pl.BlockSpec((tile_t, H), lambda i, k: (i, 0)),
        scratch_shapes=[pltpu.VMEM((tile_t, H), jnp.float32)],  # f32 accumulator
        compiler_params=pltpu.CompilerParams(
            dimension_semantics=("parallel", "arbitrary"),
            vmem_limit_bytes=vmem_limit,
        ),
        cost_estimate=cost,
    )(x2d, a2d, w1c, b1r, w2c, b2r, g2d, bt2d)

    return out.reshape(B, S, H)


def _reference(hidden_states, attention_output, w1, b1, w2, b2, gamma, beta,
               *, eps=1e-12, compute_dtype=jnp.bfloat16):
    """Pure-JAX reference that replicates the kernel's bf16 matmul-operand casting
    (residual stays f32, matching the PyTorch BertLayerNorm path)."""
    f32 = jnp.float32
    x = hidden_states.astype(compute_dtype).astype(f32)
    a = attention_output.astype(f32)
    w1c = w1.astype(compute_dtype).astype(f32)
    w2c = w2.astype(compute_dtype).astype(f32)

    h = x @ w1c + b1.astype(f32)
    h = 0.5 * h * (1.0 + lax.erf(h * _INV_SQRT2))
    h = h.astype(compute_dtype).astype(f32) @ w2c + b2.astype(f32)
    y = h + a
    u = jnp.mean(y, axis=-1, keepdims=True)
    s = jnp.mean((y - u) ** 2, axis=-1, keepdims=True)
    y = (y - u) / jnp.sqrt(s + eps)
    return (gamma.astype(f32) * y + beta.astype(f32)).astype(hidden_states.dtype)


if __name__ == "__main__":
    # small config consistent with the module: hidden_size=32, intermediate=3072
    # (functional test only; production H should be a multiple of 128).
    B, S, H = 2, 8, 32
    I = 3072  # dense1 output hard-coded to 3072 in the module

    key = jax.random.PRNGKey(0)
    k = jax.random.split(key, 8)
    hidden_states = jax.random.normal(k[0], (B, S, H), jnp.float32)
    attention_output = jax.random.normal(k[1], (B, S, H), jnp.float32)

    # deterministic parameter init (Linear-style scales)
    w1 = jax.random.normal(k[2], (H, I), jnp.float32) * (1.0 / math.sqrt(H))
    b1 = jax.random.normal(k[3], (I,), jnp.float32) * 0.01
    w2 = jax.random.normal(k[4], (I, H), jnp.float32) * (1.0 / math.sqrt(I))
    b2 = jax.random.normal(k[5], (H,), jnp.float32) * 0.01
    gamma = jnp.ones((H,), jnp.float32)
    beta = jnp.zeros((H,), jnp.float32)

    out = bert_intermediate(hidden_states, attention_output,
                            w1, b1, w2, b2, gamma, beta)
    out = jax.block_until_ready(out)

    ref = _reference(hidden_states, attention_output, w1, b1, w2, b2, gamma, beta)
    assert out.shape == (B, S, H)
    assert jnp.allclose(out, ref, atol=5e-3, rtol=5e-3), "mismatch vs reference"

    print("KERNEL_OK")
</pallas_src>

<mosaic_0001>
module attributes {stable_mosaic.version = 11 : i64} {
  func.func @_bert_intermediate_kernel(%arg0: i32, %arg1: i32, %arg2: memref<16x32xbf16, #tpu.memory_space<vmem>>, %arg3: memref<16x32xf32, #tpu.memory_space<vmem>>, %arg4: memref<32x512xbf16, #tpu.memory_space<vmem>>, %arg5: memref<1x512xf32, #tpu.memory_space<vmem>>, %arg6: memref<512x32xbf16, #tpu.memory_space<vmem>>, %arg7: memref<1x32xf32, #tpu.memory_space<vmem>>, %arg8: memref<1x32xf32, #tpu.memory_space<vmem>>, %arg9: memref<1x32xf32, #tpu.memory_space<vmem>>, %arg10: memref<16x32xf32, #tpu.memory_space<vmem>>, %arg11: memref<16x32xf32, #tpu.memory_space<vmem>>) attributes {dimension_semantics = [#tpu.dimension_semantics<parallel>, #tpu.dimension_semantics<arbitrary>], iteration_bounds = array<i64: 1, 6>, scalar_prefetch = 0 : i64, scratch_operands = 1 : i64, tpu.core_type = #tpu.core_type<tc>, window_params = [{transform_indices = @transform_0, window_bounds = array<i64: 16, 32>}, {transform_indices = @transform_1, window_bounds = array<i64: 16, 32>}, {transform_indices = @transform_2, window_bounds = array<i64: 32, 512>}, {transform_indices = @transform_3, window_bounds = array<i64: 1, 512>}, {transform_indices = @transform_4, window_bounds = array<i64: 512, 32>}, {pipeline_mode = #tpu.pipeline_mode<synchronous>, transform_indices = @transform_5, window_bounds = array<i64: 1, 32>}, {pipeline_mode = #tpu.pipeline_mode<synchronous>, transform_indices = @transform_6, window_bounds = array<i64: 1, 32>}, {pipeline_mode = #tpu.pipeline_mode<synchronous>, transform_indices = @transform_7, window_bounds = array<i64: 1, 32>}, {transform_indices = @transform_8, window_bounds = array<i64: 16, 32>}]} {
    %c0_i32 = arith.constant 0 : i32
    %0 = arith.cmpi eq, %arg1, %c0_i32 : i32
    %1 = arith.extui %0 : i1 to i32
    %c0_i32_0 = arith.constant 0 : i32
    %2 = arith.cmpi ne, %1, %c0_i32_0 : i32
    scf.if %2 {
      %cst_17 = arith.constant 0.000000e+00 : f32
      %26 = vector.broadcast %cst_17 : f32 to vector<16x32xf32>
      %c0_18 = arith.constant 0 : index
      %c0_19 = arith.constant 0 : index
      %27 = vector.load %arg11[%c0_18, %c0_19] : memref<16x32xf32, #tpu.memory_space<vmem>>, vector<16x32xf32>
      tpu.vector_store %arg11[%c0_18, %c0_19], %26 {strides = array<i32>} : memref<16x32xf32, #tpu.memory_space<vmem>>, vector<16x32xf32>,
    } else {
    }
    %c0 = arith.constant 0 : index
    %c0_1 = arith.constant 0 : index
    %3 = vector.load %arg2[%c0, %c0_1] : memref<16x32xbf16, #tpu.memory_space<vmem>>, vector<16x32xbf16>
    %c0_2 = arith.constant 0 : index
    %c0_3 = arith.constant 0 : index
    %4 = vector.load %arg4[%c0_2, %c0_3] : memref<32x512xbf16, #tpu.memory_space<vmem>>, vector<32x512xbf16>
    %cst = arith.constant dense<0.000000e+00> : vector<16x512xf32>
    %5 = tpu.matmul %3, %4, %cst {dimension_numbers = #tpu.dot_dimension_numbers<[1], [0], [0], [1], [0, 0, 1, 1], [], []>} : vector<16x32xbf16>, vector<32x512xbf16>, vector<16x512xf32> -> vector<16x512xf32>
    %c0_4 = arith.constant 0 : index
    %c0_5 = arith.constant 0 : index
    %6 = vector.load %arg5[%c0_4, %c0_5] : memref<1x512xf32, #tpu.memory_space<vmem>>, vector<1x512xf32>
    %7 = vector.broadcast %6 : vector<1x512xf32> to vector<16x512xf32>
    %8 = arith.addf %5, %7 : vector<16x512xf32>
    %cst_6 = arith.constant 5.000000e-01 : f32
    %9 = vector.broadcast %cst_6 : f32 to vector<16x512xf32>
    %10 = arith.mulf %9, %8 : vector<16x512xf32>
    %cst_7 = arith.constant 0.707106769 : f32
    %11 = vector.broadcast %cst_7 : f32 to vector<16x512xf32>
    %12 = arith.mulf %8, %11 : vector<16x512xf32>
    %13 = math.erf %12 : vector<16x512xf32>
    %cst_8 = arith.constant 1.000000e+00 : f32
    %14 = vector.broadcast %cst_8 : f32 to vector<16x512xf32>
    %15 = arith.addf %14, %13 : vector<16x512xf32>
    %16 = arith.mulf %10, %15 : vector<16x512xf32>
    %c0_9 = arith.constant 0 : index
    %c0_10 = arith.constant 0 : index
    %17 = vector.load %arg11[%c0_9, %c0_10] : memref<16x32xf32, #tpu.memory_space<vmem>>, vector<16x32xf32>
    %18 = arith.truncf %16 : vector<16x512xf32> to vector<16x512xbf16>
    %c0_11 = arith.constant 0 : index
    %c0_12 = arith.constant 0 : index
    %19 = vector.load %arg6[%c0_11, %c0_12] : memref<512x32xbf16, #tpu.memory_space<vmem>>, vector<512x32xbf16>
    %cst_13 = arith.constant dense<0.000000e+00> : vector<16x32xf32>
    %20 = tpu.matmul %18, %19, %cst_13 {dimension_numbers = #tpu.dot_dimension_numbers<[1], [0], [0], [1], [0, 0, 1, 1], [], []>} : vector<16x512xbf16>, vector<512x32xbf16>, vector<16x32xf32> -> vector<16x32xf32>
    %21 = arith.addf %17, %20 : vector<16x32xf32>
    %c0_14 = arith.constant 0 : index
    %c0_15 = arith.constant 0 : index
    %22 = vector.load %arg11[%c0_14, %c0_15] : memref<16x32xf32, #tpu.memory_space<vmem>>, vector<16x32xf32>
    tpu.vector_store %arg11[%c0_14, %c0_15], %21 {strides = array<i32>} : memref<16x32xf32, #tpu.memory_space<vmem>>, vector<16x32xf32>,
    %c5_i32 = arith.constant 5 : i32
    %23 = arith.cmpi eq, %arg1, %c5_i32 : i32
    %24 = arith.extui %23 : i1 to i32
    %c0_i32_16 = arith.constant 0 : i32
    %25 = arith.cmpi ne, %24, %c0_i32_16 : i32
    scf.if %25 {
      %c0_17 = arith.constant 0 : index
      %c0_18 = arith.constant 0 : index
      %26 = vector.load %arg11[%c0_17, %c0_18] : memref<16x32xf32, #tpu.memory_space<vmem>>, vector<16x32xf32>
      %c0_19 = arith.constant 0 : index
      %c0_20 = arith.constant 0 : index
      %27 = vector.load %arg7[%c0_19, %c0_20] : memref<1x32xf32, #tpu.memory_space<vmem>>, vector<1x32xf32>
      %28 = vector.broadcast %27 : vector<1x32xf32> to vector<16x32xf32>
      %29 = arith.addf %26, %28 : vector<16x32xf32>
      %c0_21 = arith.constant 0 : index
      %c0_22 = arith.constant 0 : index
      %30 = vector.load %arg3[%c0_21, %c0_22] : memref<16x32xf32, #tpu.memory_space<vmem>>, vector<16x32xf32>
      %31 = arith.addf %29, %30 : vector<16x32xf32>
      %cst_23 = arith.constant dense<0.000000e+00> : vector<16xf32>
      %32 = vector.multi_reduction <add>, %31, %cst_23 [1] : vector<16x32xf32> to vector<16xf32>
      %33 = vector.shape_cast %32 : vector<16xf32> to vector<16x1xf32>
      %cst_24 = arith.constant 3.200000e+01 : f32
      %34 = vector.broadcast %cst_24 : f32 to vector<16x1xf32>
      %35 = arith.divf %33, %34 : vector<16x1xf32>
      %36 = vector.broadcast %35 : vector<16x1xf32> to vector<16x32xf32>
      %37 = arith.subf %31, %36 : vector<16x32xf32>
      %38 = arith.mulf %37, %37 : vector<16x32xf32>
      %cst_25 = arith.constant dense<0.000000e+00> : vector<16xf32>
      %39 = vector.multi_reduction <add>, %38, %cst_25 [1] : vector<16x32xf32> to vector<16xf32>
      %40 = vector.shape_cast %39 : vector<16xf32> to vector<16x1xf32>
      %cst_26 = arith.constant 3.200000e+01 : f32
      %41 = vector.broadcast %cst_26 : f32 to vector<16x1xf32>
      %42 = arith.divf %40, %41 : vector<16x1xf32>
      %43 = vector.broadcast %35 : vector<16x1xf32> to vector<16x32xf32>
      %44 = arith.subf %31, %43 : vector<16x32xf32>
      %cst_27 = arith.constant 9.99999996E-13 : f32
      %45 = vector.broadcast %cst_27 : f32 to vector<16x1xf32>
      %46 = arith.addf %42, %45 : vector<16x1xf32>
      %47 = math.rsqrt %46 : vector<16x1xf32>
      %48 = vector.broadcast %47 : vector<16x1xf32> to vector<16x32xf32>
      %49 = arith.mulf %44, %48 : vector<16x32xf32>
      %c0_28 = arith.constant 0 : index
      %c0_29 = arith.constant 0 : index
      %50 = vector.load %arg8[%c0_28, %c0_29] : memref<1x32xf32, #tpu.memory_space<vmem>>, vector<1x32xf32>
      %51 = vector.broadcast %50 : vector<1x32xf32> to vector<16x32xf32>
      %52 = arith.mulf %51, %49 : vector<16x32xf32>
      %c0_30 = arith.constant 0 : index
      %c0_31 = arith.constant 0 : index
      %53 = vector.load %arg9[%c0_30, %c0_31] : memref<1x32xf32, #tpu.memory_space<vmem>>, vector<1x32xf32>
      %54 = vector.broadcast %53 : vector<1x32xf32> to vector<16x32xf32>
      %55 = arith.addf %52, %54 : vector<16x32xf32>
      %c0_32 = arith.constant 0 : index
      %c0_33 = arith.constant 0 : index
      %56 = vector.load %arg10[%c0_32, %c0_33] : memref<16x32xf32, #tpu.memory_space<vmem>>, vector<16x32xf32>
      tpu.vector_store %arg10[%c0_32, %c0_33], %55 {strides = array<i32>} : memref<16x32xf32, #tpu.memory_space<vmem>>, vector<16x32xf32>,
    } else {
    }
    return
  }
  func.func @transform_0(%arg0: i32, %arg1: i32) -> (i32, i32) {
    %c0_i32 = arith.constant 0 : i32
    %c0_i32_0 = arith.constant 0 : i32
    return %arg0, %c0_i32 : i32, i32
  }
  func.func @transform_1(%arg0: i32, %arg1: i32) -> (i32, i32) {
    %c0_i32 = arith.constant 0 : i32
    %c0_i32_0 = arith.constant 0 : i32
    return %arg0, %c0_i32 : i32, i32
  }
  func.func @transform_2(%arg0: i32, %arg1: i32) -> (i32, i32) {
    %c0_i32 = arith.constant 0 : i32
    %c0_i32_0 = arith.constant 0 : i32
    return %c0_i32, %arg1 : i32, i32
  }
  func.func @transform_3(%arg0: i32, %arg1: i32) -> (i32, i32) {
    %c0_i32 = arith.constant 0 : i32
    %c0_i32_0 = arith.constant 0 : i32
    return %c0_i32, %arg1 : i32, i32
  }
  func.func @transform_4(%arg0: i32, %arg1: i32) -> (i32, i32) {
    %c0_i32 = arith.constant 0 : i32
    %c0_i32_0 = arith.constant 0 : i32
    return %arg1, %c0_i32 : i32, i32
  }
  func.func @transform_5(%arg0: i32, %arg1: i32) -> (i32, i32) {
    %c0_i32 = arith.constant 0 : i32
    %c0_i32_0 = arith.constant 0 : i32
    %c0_i32_1 = arith.constant 0 : i32
    return %c0_i32, %c0_i32_0 : i32, i32
  }
  func.func @transform_6(%arg0: i32, %arg1: i32) -> (i32, i32) {
    %c0_i32 = arith.constant 0 : i32
    %c0_i32_0 = arith.constant 0 : i32
    %c0_i32_1 = arith.constant 0 : i32
    return %c0_i32, %c0_i32_0 : i32, i32
  }
  func.func @transform_7(%arg0: i32, %arg1: i32) -> (i32, i32) {
    %c0_i32 = arith.constant 0 : i32
    %c0_i32_0 = arith.constant 0 : i32
    %c0_i32_1 = arith.constant 0 : i32
    return %c0_i32, %c0_i32_0 : i32, i32
  }
  func.func @transform_8(%arg0: i32, %arg1: i32) -> (i32, i32) {
    %c0_i32 = arith.constant 0 : i32
    %c0_i32_0 = arith.constant 0 : i32
    return %arg0, %c0_i32 : i32, i32
  }
}

</mosaic_0001>

<bundles_post_ra>
// kernel: tpu_custom_call.1
= control target key start
LH: loop header
LB: loop body
LE: loop exit
PB: predicated region body
PF: predicated region fallthrough
CT: control target
= control target key end

     0   :  { %13 = vsyncpa [#allocation5], 0  ;;  %s1524_s27 = smov 0   ;;  %s1526_s28 = smov 0   ;;  %s1694_s0 = inlined_call_operand.vmem [shape: bf16[16,32], index: 0, kind: input, shape index: {}]   ;;  %s1695_s1 = inlined_call_operand.vmem [shape: f32[16,32], index: 1, kind: input, shape index: {}]   ;;  %s1696_s2 = inlined_call_operand.vmem [shape: bf16[32,3072], index: 2, kind: input, shape index: {}]   ;;  %s1697_s3 = inlined_call_operand.vmem [shape: f32[1,3072], index: 3, kind: input, shape index: {}]   ;;  %s1698_s4 = inlined_call_operand.vmem [shape: bf16[3072,32], index: 4, kind: input, shape index: {}]   ;;  %s1699_s5 = inlined_call_operand.vmem [shape: f32[1,32], index: 5, kind: input, shape index: {}]   ;;  %s1700_s6 = inlined_call_operand.vmem [shape: f32[1,32], index: 6, kind: input, shape index: {}]   ;;  %s1701_s7 = inlined_call_operand.vmem [shape: f32[1,32], index: 7, kind: input, shape index: {}]   ;;  %s1702_s8 = inlined_call_operand.hbm [shape: f32[16,32], index: 8, kind: output, shape index: {}]  }
   0x1   :  { %s1528_s29 = smov 0   ;;  %s1530_s30 = smov 0  }
   0x2   :  { %s1532_s9 = smov 0  }
   0x3 LB: > { %s1178_s10 = sadd.s32 4294967295, %s1472_s9   ;;  %s28_s11 = sadd.s32 1, %s1468_s30  ;;  %s1472_s9 = sphi %s1532_s9, %s19_s9   ;;  %s1468_s30 = sphi %s1530_s30, %s1707_s30   ;;  %s1464_s29 = sphi %s1528_s29, %s1706_s29   ;;  %s1460_s28 = sphi %s1526_s28, %s1705_s28   ;;  %s1456_s27 = sphi %s1524_s27, %s1704_s27  }
   0x4   : > { %p29_p0 = scmp.ge.s32.totalorder %s28_s11, 6  ;;  %p97_p1 = scmp.ne.s32.totalorder %s1460_s28, %s1456_s27 }
   0x5   : > { %p98_p2 = scmp.eq.s32.totalorder %s1472_s9, 0  ;;  %s90_s13 = sadd.s32 1, %s1460_s28 }
   0x6   : > { %s1709_s11 = smov (%p29_p0, %s28_s11), 0  ;;  %p1182_p5 = scmp.ge.s32.totalorder %s1472_s9, 6 }
   0x7   : > { %p99_p3 = por %p98_p2, %p97_p1  ;;  %s87_s12 = ssub.s32 %s1468_s30, %s1709_s11 }
   0x8   : > { %p88_p4 = scmp.eq.s32.totalorder %s87_s12, 0  ;;  %291 = sbr.rel (%p1182_p5) target bundleno = 23 (0x17), region = 36 }
   0xa   : > { %s1560_s14 = scalar_select %p88_p4, %s1460_s28, %s90_s13  }
   0xf   : > { %294 = sbr.rel (!%p99_p3) target bundleno = 23 (0x17), region = 40  ;;  %s296_s15 = sand.u32 (%p99_p3), 1, %s1460_s28  }
  0x10   : > { %s1243_s16 = sshll.u32 (%p99_p3), %s1468_s30, 4  ;;  %s1183_s17 = sshll.u32 (%p99_p3), %s296_s15, 6 }
  0x11   : > { %s301_s20 = scalar_lea.vmem (%p99_p3), %s1696_s2, %s1243_s16  ;;  %s298_s21 = scalar_lea.vmem (%p99_p3), [#allocation3], %s1183_s17 }
  0x12   : > { %v314_v0 = vld [vmem:[%s301_s20] sm:$0xff] (%p99_p3)  ;;  %v316_v1 = vld [vmem:[%s301_s20 + $0x8] sm:$0xff] (%p99_p3) }
  0x13   : > { %v318_v2 = vld [vmem:[%s301_s20 + $0x60] sm:$0xff] (%p99_p3)  ;;  %315 = vst [vmem:[%s298_s21] sm:$0xff] (%p99_p3), %v314_v0  ;;  %317 = vst [vmem:[%s298_s21 + $0x8] sm:$0xff] (%p99_p3), %v316_v1  ;;  %v320_v3 = vld [vmem:[%s301_s20 + $0x68] sm:$0xff] (%p99_p3) }
  0x14   : > { %319 = vst [vmem:[%s298_s21 + $0x10] sm:$0xff] (%p99_p3), %v318_v2  ;;  %v322_v4 = vld [vmem:[%s301_s20 + $0xc0] sm:$0xff] (%p99_p3)  ;;  %v324_v5 = vld [vmem:[%s301_s20 + $0xc8] sm:$0xff] (%p99_p3)  ;;  %321 = vst [vmem:[%s298_s21 + $0x18] sm:$0xff] (%p99_p3), %v320_v3 }
  0x15   : > { %323 = vst [vmem:[%s298_s21 + $0x20] sm:$0xff] (%p99_p3), %v322_v4  ;;  %325 = vst [vmem:[%s298_s21 + $0x28] sm:$0xff] (%p99_p3), %v324_v5  ;;  %v326_v6 = vld [vmem:[%s301_s20 + $0x120] sm:$0xff] (%p99_p3)  ;;  %v328_v7 = vld [vmem:[%s301_s20 + $0x128] sm:$0xff] (%p99_p3) }
  0x16   : > { %327 = vst [vmem:[%s298_s21 + $0x30] sm:$0xff] %v326_v6  ;;  %329 = vst [vmem:[%s298_s21 + $0x38] sm:$0xff] %v328_v7 }
  0x17 PF: > { %p1186_p6 = scmp.ge.s32.totalorder %s1472_s9, 1  ;;  %p351_p7 = scmp.lt.s32.totalorder %s1472_s9, 7 }
  0x19   : > { %p352_p8 = pnand %p1186_p6, %p351_p7 }
  0x1a   : > { %s358_s22 = sand.u32 (!%p352_p8), 1, %s1456_s27   ;;  %s1188_s23 = sshll.u32 (!%p352_p8), %s1464_s29, 2 }
  0x1b   : > { %355 = sbr.rel (%p352_p8) target bundleno = 869 (0x365), region = 71  ;;  %s1187_s24 = sshll.u32 (!%p352_p8), %s358_s22, 6 }
  0x1c   : > { %p419_p9 = scmp.lt.s32.totalorder (!%p352_p8), %s1188_s23, 23  ;;  %s1189_s25 = sshll.u32 (!%p352_p8), %s1464_s29, 6 }
  0x1d   : > { %p424_p10 = scmp.lt.s32.totalorder (!%p352_p8), %s1189_s25, 383  ;;  %s360_s27 = scalar_lea.vmem (!%p352_p8), [#allocation3], %s1187_s24 }
  0x1e   : > { %p1191_p11 = scmp.ne.s32.totalorder (!%p352_p8), %s1464_s29, 0 }
  0x22   : > { %s1711_s23 = smov (!%p419_p9, %s1188_s23), 23  ;;  %s1713_s25 = smov (!%p424_p10, %s1189_s25), 383 }
  0x23   : > { %s421_s13 = scalar_lea.vmem %s1697_s3, %s1711_s23  ;;  %s1190_s15 = sshll.u32 %s1713_s25, 2  ;;  %vm435_vm0 = vcmask (!%p1191_p11), 261120   ;;  %v1474_v8 = vmov (!%p1191_p11), 0.0  }
  0x24   : > { %s1582_s18 = scalar_lea.vmem %s1698_s4, %s1190_s15  ;;  %434 = sbr.rel (%p1191_p11) target bundleno = 43 (0x2b), region = 79  ;;  %436 = vst.msk [vmem:[#allocation2] sm:$0xff] (!%p1191_p11), %vm435_vm0, %v1474_v8  ;;  %437 = vst.msk [vmem:[#allocation2 + $0x8] sm:$0xff] (!%p1191_p11), %vm435_vm0, %v1474_v8 }
  0x2b PF: > { %v1339_v9 = vld [vmem:[%s360_s27 + $0x4] ss:$16 sps:$4 sm:$0xff]   ;;  %v1341_v10 = vld [vmem:[%s360_s27 + $0xc] ss:$16 sps:$4 sm:$0xff]   ;;  %v1475_v11 = vmov 0   ;;  %vm515_vm1 = vcmask 261120   ;;  %v450_v51 = vlaneseq }
  0x2c   : > { %551 = vmatprep.mubr.bf16.mxu0 %v1475_v11  ;;  %594 = vmatprep.mubr.bf16.mxu1 %v1475_v11  ;;  %v1343_v12 = vld [vmem:[%s360_s27] ss:$16 sps:$4 sm:$0xff]   ;;  %v1344_v13 = vld [vmem:[%s360_s27 + $0x8] ss:$16 sps:$4 sm:$0xff]   ;;  %v1345_v14 = vld [vmem:[%s360_s27 + $0x24] ss:$16 sps:$4 sm:$0xff]  }
  0x2d   : > { %519 = vmatprep.subr.bf16.mxu0 %v1339_v9  ;;  %562 = vmatprep.subr.bf16.mxu1 %v1341_v10  ;;  %v1347_v15 = vld [vmem:[%s360_s27 + $0x2c] ss:$16 sps:$4 sm:$0xff]   ;;  %v1349_v16 = vld [vmem:[%s360_s27 + $0x20] ss:$16 sps:$4 sm:$0xff]   ;;  %v1350_v17 = vld [vmem:[%s360_s27 + $0x28] ss:$16 sps:$4 sm:$0xff]  }
  0x2e   : > { %520 = vmatpush1.bf16.msra.mxu0 %v1343_v12  ;;  %563 = vmatpush1.bf16.msra.mxu1 %v1344_v13  ;;  %v1351_v18 = vld [vmem:[%s1694_s0] sm:$0xff]   ;;  %v1356_v23 = vld [vmem:[%s1582_s18 + $0x48] sm:$0xff]   ;;  %v1360_v27 = vld [vmem:[%s1582_s18 + $0x50] sm:$0xff]   ;;  %v451_v52 = vshrl.u32 %v450_v51, 7  ;;  %p1235_p12 = scmp.ne.s32.totalorder %s1464_s29, 5 }
  0x2f   : > { %521 = vmatprep.subr.bf16.mxu0 %v1345_v14  ;;  %564 = vmatprep.subr.bf16.mxu1 %v1347_v15  ;;  %v1352_v19 = vld [vmem:[%s1582_s18 + $0x40] sm:$0xff]   ;;  %v1357_v24 = vld [vmem:[%s1582_s18 + $0xc8] sm:$0xff]   ;;  %v1361_v28 = vld [vmem:[%s1582_s18 + $0xd0] sm:$0xff]  }
  0x30   : > { %v1353_v20 = vld [vmem:[%s1582_s18 + $0xc0] sm:$0xff]   ;;  %v1358_v25 = vld [vmem:[%s1582_s18 + $0x8] sm:$0xff]   ;;  %v1362_v29 = vld [vmem:[%s1582_s18 + $0x10] sm:$0xff]   ;;  %v452_v53 = vsub.s32 0, %v451_v52  ;;  %v460_v54 = vsub.s32 2, %v451_v52  ;;  %v456_v56 = vsub.s32 1, %v451_v52 }
  0x31   : > { %v1354_v21 = vld [vmem:[%s1582_s18] sm:$0xff]   ;;  %v1359_v26 = vld [vmem:[%s1582_s18 + $0x88] sm:$0xff]   ;;  %v1363_v30 = vld [vmem:[%s1582_s18 + $0x90] sm:$0xff]   ;;  %v464_v57 = vsub.s32 3, %v451_v52 }
  0x32   : > { %522 = vmatpush1.bf16.msra.mxu0 %v1349_v16  ;;  %565 = vmatpush1.bf16.msra.mxu1 %v1350_v17  ;;  %v1355_v22 = vld [vmem:[%s1582_s18 + $0x80] sm:$0xff]   ;;  %v1364_v31 = vld [vmem:[%s1582_s18 + $0x58] sm:$0xff]   ;;  %v1372_v39 = vld [vmem:[%s1582_s18 + $0x68] sm:$0xff]  }
  0x33   : > { %1244 = vmatprep.subr.bf16.mxu0 %v1352_v19  ;;  %1266 = vmatprep.subr.bf16.mxu1 %v1353_v20  ;;  %v1365_v32 = vld [vmem:[%s1582_s18 + $0xd8] sm:$0xff]   ;;  %v1368_v35 = vld [vmem:[%s1582_s18 + $0x60] sm:$0xff]   ;;  %v1373_v40 = vld [vmem:[%s1582_s18 + $0xe8] sm:$0xff]  }
  0x34   : > { %v1366_v33 = vld [vmem:[%s1582_s18 + $0x18] sm:$0xff]   ;;  %v1369_v36 = vld [vmem:[%s1582_s18 + $0xe0] sm:$0xff]   ;;  %v1374_v41 = vld [vmem:[%s1582_s18 + $0x28] sm:$0xff]  }
  0x35   : > { %1201 = vmatmul.mubr.msk.bf16.vlgmr.msra.gmra.mrb[0].mxu0 %vm515_vm1, %v1351_v18  ;;  %1202 = vmatmul.mubr.msk.bf16.vlgmr.msra.gmra.mrb[0].mxu1 %vm515_vm1, %v1351_v18  ;;  %v1367_v34 = vld [vmem:[%s1582_s18 + $0x98] sm:$0xff]   ;;  %v1370_v37 = vld [vmem:[%s1582_s18 + $0x20] sm:$0xff]   ;;  %v1375_v42 = vld [vmem:[%s1582_s18 + $0xa8] sm:$0xff]  }
  0x36   : > { %1245 = vmatpush3.bf16.msra.mxu0 %v1354_v21  ;;  %1267 = vmatpush3.bf16.msra.mxu1 %v1355_v22  ;;  %v1371_v38 = vld [vmem:[%s1582_s18 + $0xa0] sm:$0xff]   ;;  %v1376_v43 = vld [vmem:[%s1582_s18 + $0x70] sm:$0xff]   ;;  %v1380_v47 = vld [vmem:[%s1582_s18 + $0x78] sm:$0xff]  }
  0x37   : > { %1246 = vmatprep.subr.bf16.mxu0 %v1356_v23  ;;  %1268 = vmatprep.subr.bf16.mxu1 %v1357_v24  ;;  %v1377_v44 = vld [vmem:[%s1582_s18 + $0xf0] sm:$0xff]   ;;  %v1381_v48 = vld [vmem:[%s1582_s18 + $0xf8] sm:$0xff]   ;;  %v448_v55 = vld [vmem:[%s421_s13] sm:$0xf] }
  0x38   : > { %v1378_v45 = vld [vmem:[%s1582_s18 + $0x30] sm:$0xff]   ;;  %v1382_v49 = vld [vmem:[%s1582_s18 + $0x38] sm:$0xff]   ;;  %v453_v58 = vrot.slane %v448_v55, %v452_v53  ;;  %v461_v59 = vrot.slane %v448_v55, %v460_v54  ;;  %v457_v60 = vrot.slane %v448_v55, %v456_v56  ;;  %v465_v61 = vrot.slane %v448_v55, %v464_v57 }
  0x39   : > { %v1379_v46 = vld [vmem:[%s1582_s18 + $0xb0] sm:$0xff]   ;;  %v1383_v50 = vld [vmem:[%s1582_s18 + $0xb8] sm:$0xff]  }
  0x3a   : > { %1247 = vmatpush3.bf16.msra.mxu0 %v1358_v25  ;;  %1269 = vmatpush3.bf16.msra.mxu1 %v1359_v26 }
  0x3b   : > { %1248 = vmatprep.subr.bf16.mxu0 %v1360_v27  ;;  %1270 = vmatprep.subr.bf16.mxu1 %v1361_v28 }
  0x3e   : > { %1249 = vmatpush3.bf16.msra.mxu0 %v1362_v29  ;;  %1271 = vmatpush3.bf16.msra.mxu1 %v1363_v30 }
  0x3f   : > { %1250 = vmatprep.subr.bf16.mxu0 %v1364_v31  ;;  %1272 = vmatprep.subr.bf16.mxu1 %v1365_v32 }
  0x42   : > { %1251 = vmatpush3.bf16.msra.mxu0 %v1366_v33  ;;  %1273 = vmatpush3.bf16.msra.mxu1 %v1367_v34 }
  0x43   : > { %1252 = vmatprep.subr.bf16.mxu0 %v1368_v35  ;;  %1274 = vmatprep.subr.bf16.mxu1 %v1369_v36 }
  0x46   : > { %1253 = vmatpush3.bf16.msra.mxu0 %v1370_v37  ;;  %1275 = vmatpush3.bf16.msra.mxu1 %v1371_v38 }
  0x47   : > { %1254 = vmatprep.subr.bf16.mxu0 %v1372_v39  ;;  %1276 = vmatprep.subr.bf16.mxu1 %v1373_v40 }
  0x4a   : > { %1255 = vmatpush3.bf16.msra.mxu0 %v1374_v41  ;;  %1277 = vmatpush3.bf16.msra.mxu1 %v1375_v42 }
  0x4b   : > { %1256 = vmatprep.subr.bf16.mxu0 %v1376_v43  ;;  %1278 = vmatprep.subr.bf16.mxu1 %v1377_v44 }
  0x4e   : > { %1257 = vmatpush3.bf16.msra.mxu0 %v1378_v45  ;;  %1279 = vmatpush3.bf16.msra.mxu1 %v1379_v46 }
  0x4f   : > { %1258 = vmatprep.subr.bf16.mxu0 %v1380_v47  ;;  %1280 = vmatprep.subr.bf16.mxu1 %v1381_v48 }
  0x52   : > { %1259 = vmatpush3.bf16.msra.mxu0 %v1382_v49  ;;  %1281 = vmatpush3.bf16.msra.mxu1 %v1383_v50 }
 0x108   : > { %v553_v62 = vpop.f32.mrb[0].mxu0  ;;  %v596_v63 = vpop.f32.mrb[0].mxu1 }
 0x109   : > { %v554_v0 = vadd.f32 %v553_v62, %v453_v58  ;;  %v597_v1 = vadd.f32 %v596_v63, %v461_v59  ;;  %v555_v2 = vpop.f32.mrb[1].mxu0  ;;  %v598_v3 = vpop.f32.mrb[1].mxu1 }
 0x10a   : > { %v556_v4 = vadd.f32 %v555_v2, %v457_v60  ;;  %v599_v5 = vadd.f32 %v598_v3, %v465_v61  ;;  %v557_v6 = vpop.f32.mrb[2].mxu0  ;;  %v600_v7 = vpop.f32.mrb[2].mxu1  ;;  %v645_v3 = vld [vmem:[#allocation2] sm:$0xff] }
 0x10b   : > { %v613_v8 = vmul.f32 0.70710677, %v554_v0  ;;  %v615_v9 = vmul.f32 0.70710677, %v597_v1  ;;  %v558_v12 = vadd.f32 %v557_v6, %v453_v58  ;;  %v601_v13 = vadd.f32 %v600_v7, %v461_v59  ;;  %v559_v14 = vpop.f32.mrb[3].mxu0  ;;  %v602_v15 = vpop.f32.mrb[3].mxu1 }
 0x10c   : > { %v614_v10 = vmul.f32 0.70710677, %v556_v4  ;;  %v616_v11 = vmul.f32 0.70710677, %v599_v5  ;;  %v560_v16 = vadd.f32 %v559_v14, %v457_v60  ;;  %v603_v17 = vadd.f32 %v602_v15, %v465_v61  ;;  %v1008_v14 = vld [vmem:[%s1695_s1] sm:$0xff] (!%p1235_p12) }
 0x10d   : > { %1384 = verf.f32 %v613_v8  ;;  %v617_v18 = vmul.f32 0.70710677, %v558_v12  ;;  %v619_v19 = vmul.f32 0.70710677, %v601_v13  ;;  %v605_v28 = vmul.f32 0.5, %v554_v0  ;;  %v646_v8 = vld [vmem:[#allocation2 + $0x8] sm:$0xff] }
 0x10e   : > { %1386 = verf.f32 %v615_v9  ;;  %v618_v20 = vmul.f32 0.70710677, %v560_v16  ;;  %v620_v21 = vmul.f32 0.70710677, %v603_v17  ;;  %v607_v29 = vmul.f32 0.5, %v597_v1 }
 0x10f   : > { %1388 = verf.f32 %v614_v10  ;;  %v606_v32 = vmul.f32 0.5, %v556_v4  ;;  %v609_v34 = vmul.f32 0.5, %v558_v12  ;;  %v608_v37 = vmul.f32 0.5, %v599_v5 }
 0x110   : > { %1390 = verf.f32 %v616_v11  ;;  %v611_v39 = vmul.f32 0.5, %v601_v13  ;;  %v610_v44 = vmul.f32 0.5, %v560_v16  ;;  %v612_v48 = vmul.f32 0.5, %v603_v17  ;;  %v1236_v13 = vld [vmem:[%s1699_s5] ss:$0 sm:$0xff] (!%p1235_p12)  ;;  %v1009_v17 = vld [vmem:[%s1695_s1 + $0x8] sm:$0xff] (!%p1235_p12) }
 0x111   : > { %1392 = verf.f32 %v617_v18 }
 0x112   : > { %1394 = verf.f32 %v619_v19 }
 0x113   : > { %1396 = verf.f32 %v618_v20 }
 0x114   : > { %1398 = verf.f32 %v620_v21 }
 0x117   : > { %v1385_v22 = vpop.eup %1384 }
 0x118   : > { %v1387_v23 = vpop.eup %1386  ;;  %v629_v26 = vadd.f32 1.0, %v1385_v22 }
 0x119   : > { %v1389_v24 = vpop.eup %1388  ;;  %v631_v30 = vadd.f32 1.0, %v1387_v23 }
 0x11a   : > { %v1391_v25 = vpop.eup %1390  ;;  %v630_v33 = vadd.f32 1.0, %v1389_v24  ;;  %v637_v42 = vmul.f32 %v629_v26, %v605_v28 }
 0x11b   : > { %v1393_v27 = vpop.eup %1392  ;;  %v632_v38 = vadd.f32 1.0, %v1391_v25  ;;  %v639_v46 = vmul.f32 %v631_v30, %v607_v29 }
 0x11c   : > { %v1395_v31 = vpop.eup %1394  ;;  %v633_v35 = vadd.f32 1.0, %v1393_v27  ;;  %v638_v50 = vmul.f32 %v630_v33, %v606_v32 }
 0x11d   : > { %v1397_v36 = vpop.eup %1396  ;;  %v635_v40 = vadd.f32 1.0, %v1395_v31  ;;  %v640_v53 = vmul.f32 %v632_v38, %v608_v37 }
 0x11e   : > { %v1399_v41 = vpop.eup %1398  ;;  %v641_v43 = vmul.f32 %v633_v35, %v609_v34  ;;  %v634_v45 = vadd.f32 1.0, %v1397_v36 }
 0x11f   : > { %v643_v47 = vmul.f32 %v635_v40, %v611_v39  ;;  %v636_v49 = vadd.f32 1.0, %v1399_v41  ;;  %v1237_v40 = vld [vmem:[%s1700_s6] ss:$0 sm:$0xff] (!%p1235_p12) }
 0x120   : > { %v647_v51 = vpack.c.bf16 %v641_v43, %v637_v42  ;;  %v642_v52 = vmul.f32 %v634_v45, %v610_v44  ;;  %v1238_v42 = vld [vmem:[%s1701_s7] ss:$0 sm:$0xff] (!%p1235_p12) }
 0x121   : > { %v649_v54 = vpack.c.bf16 %v643_v47, %v639_v46  ;;  %v644_v55 = vmul.f32 %v636_v49, %v612_v48 }
 0x122   : > { %v648_v56 = vpack.c.bf16 %v642_v52, %v638_v50 }
 0x123   : > { %v650_v57 = vpack.c.bf16 %v644_v55, %v640_v53 }
 0x124   : > { %939 = vmatprep.mubr.bf16.mxu0 %v648_v56 }
 0x125   : > { %980 = vmatprep.mubr.bf16.mxu1 %v650_v57  ;;  %940 = vmatmul.mubr.bf16.vlgmr.msra.gmra.mrb[4].mxu0 %v647_v51 }
 0x126   : > { %981 = vmatmul.mubr.bf16.vlgmr.msra.gmra.mrb[4].mxu1 %v649_v54 }
 0x1f8   : > { %v1260_v58 = vpop.f32.mrb[4].mxu0 }
 0x1f9   : > { %v1282_v59 = vpop.f32.mrb[4].mxu1  ;;  %v1261_v60 = vpop.f32.mrb[5].mxu0 }
 0x1fa   : > { %v1262_v61 = vadd.f32 %v1261_v60, %v1260_v58  ;;  %v1283_v62 = vpop.f32.mrb[5].mxu1  ;;  %v1263_v63 = vpop.f32.mrb[6].mxu0 }
 0x1fb   : > { %v1284_v0 = vadd.f32 %v1283_v62, %v1282_v59  ;;  %v1285_v1 = vpop.f32.mrb[6].mxu1  ;;  %v1264_v2 = vpop.f32.mrb[7].mxu0 }
 0x1fc   : > { %v1265_v4 = vadd.f32 %v1264_v2, %v1263_v63  ;;  %v1286_v5 = vpop.f32.mrb[7].mxu1 }
 0x1fd   : > { %v983_v6 = vadd.f32 %v1284_v0, %v1262_v61  ;;  %v1287_v7 = vadd.f32 %v1286_v5, %v1285_v1  ;;  %996 = sbr.rel (%p1235_p12) target bundleno = 843 (0x34b), region = 83 }
 0x1ff   : > { %v989_v9 = vadd.f32 %v983_v6, %v645_v3  ;;  %v986_v10 = vadd.f32 %v1287_v7, %v1265_v4 }
 0x201   : > { %991 = vst.msk [vmem:[#allocation2] sm:$0xff] %vm515_vm1, %v989_v9  ;;  %v990_v11 = vadd.f32 %v986_v10, %v646_v8 }
 0x203   : > { %992 = vst.msk [vmem:[#allocation2 + $0x8] sm:$0xff] %vm515_vm1, %v990_v11 }
 0x208   : > { %v997_v12 = vld [vmem:[#allocation2] sm:$0xff] }
 0x209   : > { %v1006_v15 = vadd.f32 %v1236_v13, %v997_v12 }
 0x20a   : > { %v998_v16 = vld [vmem:[#allocation2 + $0x8] sm:$0xff] }
 0x20b   : > { %v1007_v18 = vadd.f32 %v1236_v13, %v998_v16  ;;  %v1010_v19 = vadd.f32 %v1008_v14, %v1006_v15 }
 0x20d   : > { %v1011_v20 = vadd.f32 %v1009_v17, %v1007_v18  ;;  %v1012_v21 = vsel %vm515_vm1, %v1010_v19, 0.0 }
 0x20e   : > { %1013 = vadd.xlane.f32.xlu0 %v1012_v21 }
 0x20f   : > { %v1015_v22 = vsel %vm515_vm1, %v1011_v20, 0.0 }
 0x212   : > { %1016 = vadd.xlane.f32.xlu0 %v1015_v22 }
 0x29b   : > { %v1014_v23 = vpop.xlane.xlu0 %1013 }
 0x29c   : > { %v1019_v24 = vmul.f32 0.03125, %v1014_v23 }
 0x29e   : > { %v1021_v25 = vsub.f32 %v1010_v19, %v1019_v24 }
 0x29f   : > { %v1017_v26 = vpop.xlane.xlu0 %1016 }
 0x2a0   : > { %v1020_v27 = vmul.f32 0.03125, %v1017_v26  ;;  %v1023_v28 = vmul.f32 %v1021_v25, %v1021_v25 }
 0x2a2   : > { %v1022_v29 = vsub.f32 %v1011_v20, %v1020_v27  ;;  %v1025_v30 = vsel %vm515_vm1, %v1023_v28, 0.0 }
 0x2a3   : > { %1026 = vadd.xlane.f32.xlu1 %v1025_v30 }
 0x2a4   : > { %v1024_v31 = vmul.f32 %v1022_v29, %v1022_v29 }
 0x2a6   : > { %v1028_v32 = vsel %vm515_vm1, %v1024_v31, 0.0 }
 0x2a7   : > { %1029 = vadd.xlane.f32.xlu1 %v1028_v32 }
 0x330   : > { %v1027_v33 = vpop.xlane.xlu1 %1026 }
 0x331   : > { %v1031_v34 = vmul.f32 0.03125, %v1027_v33 }
 0x333   : > { %v1033_v35 = vadd.f32 1e-12, %v1031_v34 }
 0x334   : > { %v1030_v36 = vpop.xlane.xlu1 %1029 }
 0x335   : > { %1400 = vrsqrt.f32 %v1033_v35  ;;  %v1032_v37 = vmul.f32 0.03125, %v1030_v36 }
 0x337   : > { %v1034_v38 = vadd.f32 1e-12, %v1032_v37 }
 0x339   : > { %1402 = vrsqrt.f32 %v1034_v38 }
 0x33f   : > { %v1401_v39 = vpop.eup %1400 }
 0x340   : > { %v1037_v41 = vmul.f32 %v1401_v39, %v1021_v25 }
 0x342   : > { %v1046_v43 = vmul.f32 %v1237_v40, %v1037_v41 }
 0x343   : > { %v1403_v44 = vpop.eup %1402 }
 0x344   : > { %v1055_v45 = vadd.f32 %v1238_v42, %v1046_v43  ;;  %v1038_v46 = vmul.f32 %v1403_v44, %v1022_v29 }
 0x346   : > { %1057 = vst.msk [vmem:[#allocation4] sm:$0xff] %vm515_vm1, %v1055_v45  ;;  %v1047_v47 = vmul.f32 %v1237_v40, %v1038_v46 }
 0x348   : > { %v1056_v48 = vadd.f32 %v1238_v42, %v1047_v47 }
 0x34a   : > { %1058 = vst.msk [vmem:[#allocation4 + $0x8] sm:$0xff] %vm515_vm1, %v1056_v48 }
 0x34b PF: > { %p1653_p13 = scmp.eq.s32.totalorder %s1178_s10, 5  ;;  %s1476_s27 = smov [#allocation4]  }
 0x34c   : > { %s1068_s19 = sshll.u32 %s1476_s27, 4  ;;  %s1069_s19 = int_to_ptr.vmem [resolvable:$true] %s1068_s19 }
 0x34d   : > { %s1404_s20 = scalar_lea.vmem %s1069_s19, 256  ;;  %p1411_p3 = scmp.lt.s32.totalorder %s1069_s19, %s1069_s19 }
 0x34e   : > { %p1405_p0 = scmp.ne.s32.totalorder %s1069_s19, %s1404_s20  ;;  %p1412_p4 = scmp.lt.s32.totalorder %s1404_s20, %s1404_s20 }
 0x350   : > { %p1406_p1 = pnand %p1405_p0, %p1653_p13  ;;  %p1413_p5 = por %p1412_p4, %p1411_p3 }
 0x352   : > { %p1407_p2 = pneg %p1406_p1 }
 0x354   : > { %p1414_p6 = pnand %p1413_p5, %p1407_p2 }
 0x356   : > { %1417 = shalt.err (!%p1414_p6)
}
 0x357   : > { %s1418_s10 = scalar_lea.hbm %s1702_s8, 256 }
 0x358   : > { %p1419_p7 = scmp.ne.s32.totalorder %s1702_s8, %s1418_s10  ;;  %p1424_p10 = scmp.lt.u32.totalorder %s1418_s10, %s1702_s8 }
 0x35a   : > { %p1420_p8 = pnand %p1419_p7, %p1653_p13 }
 0x35c   : > { %p1421_p9 = pneg %p1420_p8 }
 0x35e   : > { %p1426_p11 = pnand %p1424_p10, %p1421_p9 }
 0x360   : > { %1429 = shalt.err (!%p1426_p11)
}
 0x361   : > { %s1477_s12 = smov 128   ;;  %s1478_s13 = smov 8  }
 0x362   : > { %1289 = dma.vmem_to_hbm [thread:$0]  (%p1653_p13), %s1069_s19, 256, %s1702_s8, [#allocation5], %s1477_s12, %s1477_s12, %s1478_s13  }
 0x363   : > { %1451 = dma.done.wait (%p1653_p13), [#allocation5], 256  }
 0x364   : > { %1453 = vsyncadd (%p1653_p13), [#allocation5], 4294967040 }
 0x365 PF: > { %s19_s9 = sadd.s32 1, %s1472_s9   ;;  %s1704_s27 = smov %s1460_s28 }
 0x366   : > { %p16_p12 = scmp.ge.s32.totalorder %s19_s9, 8   ;;  %s1705_s28 = smov %s1560_s14 }
 0x367   : > { %s1706_s29 = smov %s1468_s30  ;;  %s1707_s30 = smov %s1709_s11 }
 0x368   :  { %18 = sbr.rel (!%p16_p12) target bundleno = 3 (0x3), region = 128 }
 0x36f   :  { %1084 = vsyncpa [#allocation5], 1 }
 0x370   :  { %1086 = vsyncpa [#allocation5 + $0x1], 1 }

</bundles_post_ra>
